<compile_context>
chip_gen: v6e
topology: v6e:2x2x1
jax: 0.10.0
libtpu: 0.0.40
codegen_flags: <defaults>
</compile_context>

<pallas_src>
import functools

import jax
import jax.numpy as jnp
from jax.experimental import pallas as pl
from jax.experimental.pallas import tpu as pltpu

EPS = 1e-5


# --------------------------------------------------------------------------- pass A
# per-image (sum, sum_sq) of x over the spatial rows -> BN1 batch statistics
def _x_stats_kernel(x_ref, sum_ref, sq_ref):
    x = x_ref[...]                                   # (H*W, Cin) rows of one image
    c = x.shape[-1]
    sum_ref[...] = jnp.sum(x, axis=0).reshape(1, 1, c)
    sq_ref[...] = jnp.sum(x * x, axis=0).reshape(1, 1, c)


# --------------------------------------------------------------------------- pass B
# BN1(scale/shift) + ReLU -> conv1 (3x3, stride S) as 9 accumulated MXU matmuls,
# skip 1x1 conv (stride S), plus per-image partial stats for BN2 / BN_sk.
def _stage1_kernel(H, W, Ho, Wo, S,
                   x_ref, sc1_ref, sh1_ref, w1_ref, wsk_ref,
                   z1_ref, sk_ref, z1s_ref, z1q_ref, sks_ref, skq_ref,
                   ypad_ref):
    cin = x_ref.shape[-1]
    cout = z1_ref.shape[-1]

    x = x_ref[...]                                                 # (H, W, Cin)
    # fused BN1 (one FMA/element) + ReLU
    y1 = jnp.maximum(x * sc1_ref[...] + sh1_ref[...], 0.0)

    # zero-padded copy of y1 in VMEM: the zero border *is* the conv padding
    ypad_ref[...] = jnp.zeros_like(ypad_ref)
    ypad_ref[pl.ds(1, H), pl.ds(1, W), :] = y1

    # conv1 = 9 accumulated matmuls over stride-S windows (bias dropped: dead before BN2)
    acc = jnp.zeros((Ho * Wo, cout), jnp.float32)
    for ky in range(3):
        for kx in range(3):
            # all-Slice indexers only (strided ds) -> safe in interpret + Mosaic
            win = ypad_ref[pl.ds(ky, Ho, stride=S), pl.ds(kx, Wo, stride=S), :]
            win = win.reshape(Ho * Wo, cin).astype(jnp.bfloat16)
            acc += jnp.dot(win, w1_ref[ky * 3 + kx],
                           preferred_element_type=jnp.float32)
    z1_ref[...] = acc

    # skip branch: 1x1 conv with stride S == strided subsample + matmul (bias dead before BN)
    xs = x_ref[pl.ds(0, Ho, stride=S), pl.ds(0, Wo, stride=S), :]  # (Ho, Wo, Cin)
    xs = xs.reshape(Ho * Wo, cin).astype(jnp.bfloat16)
    sk = jnp.dot(xs, wsk_ref[...], preferred_element_type=jnp.float32)
    sk_ref[...] = sk

    # per-image partial stats (summed across the grid in the wrapper)
    z1s_ref[...] = jnp.sum(acc, axis=0).reshape(1, 1, cout)
    z1q_ref[...] = jnp.sum(acc * acc, axis=0).reshape(1, 1, cout)
    sks_ref[...] = jnp.sum(sk, axis=0).reshape(1, 1, cout)
    skq_ref[...] = jnp.sum(sk * sk, axis=0).reshape(1, 1, cout)


# --------------------------------------------------------------------------- pass C
# BN2(scale/shift) + ReLU -> conv2 (3x3, stride 1) + b2, skip BN(scale/shift), residual add.
def _stage2_kernel(Ho, Wo,
                   z1_ref, sk_ref, sc2_ref, sh2_ref, w2_ref, b2_ref,
                   sck_ref, shk_ref, out_ref, ypad_ref):
    cout = z1_ref.shape[-1]

    y2 = jnp.maximum(z1_ref[...] * sc2_ref[...] + sh2_ref[...], 0.0)   # (Ho*Wo, Cout)

    ypad_ref[...] = jnp.zeros_like(ypad_ref)
    ypad_ref[pl.ds(1, Ho), pl.ds(1, Wo), :] = y2.reshape(Ho, Wo, cout)

    acc = jnp.zeros((Ho * Wo, cout), jnp.float32)
    for ky in range(3):
        for kx in range(3):
            win = ypad_ref[pl.ds(ky, Ho), pl.ds(kx, Wo), :]            # (Ho, Wo, Cout)
            win = win.reshape(Ho * Wo, cout).astype(jnp.bfloat16)
            acc += jnp.dot(win, w2_ref[ky * 3 + kx],
                           preferred_element_type=jnp.float32)

    net = acc + b2_ref[...]                      # conv2 bias is live (no BN after it)
    skip = sk_ref[...] * sck_ref[...] + shk_ref[...]
    out_ref[...] = net + skip


# --------------------------------------------------------------------------- glue
def _fold_bn(sum_, sumsq, count, gamma, beta):
    # training-mode BN (biased variance), folded into one scale/shift per channel.
    mean = sum_ / count
    var = jnp.maximum(sumsq / count - mean * mean, 0.0)
    scale = gamma * jax.lax.rsqrt(var + EPS)
    shift = beta - mean * scale
    return scale, shift


def resnet_preact_block_forward(x_nchw, params, stride):
    N, Cin, H, W = x_nchw.shape
    Cout = params["w1"].shape[-1]
    # TODO(synk): identity-skip variant (stride == 1, in_channel == out_channel) not implemented.
    assert stride == 2, "this script implements the projection-skip configuration"
    S = stride
    Ho = (H + 2 - 3) // S + 1
    Wo = (W + 2 - 3) // S + 1
    HWo = Ho * Wo
    f32 = jnp.float32

    # TODO(synk): accepting NHWC at the boundary would drop this transpose (kept for PyTorch parity).
    x = jnp.transpose(x_nchw, (0, 2, 3, 1)).astype(f32)            # NHWC
    x2d = x.reshape(N * H * W, Cin)

    # weights: pre-cast to bf16 once; 3x3 kernels flattened to 9 taps of (Cin, Cout)
    w1_taps = params["w1"].reshape(9, Cin, Cout).astype(jnp.bfloat16)
    w2_taps = params["w2"].reshape(9, Cout, Cout).astype(jnp.bfloat16)
    wsk = params["wsk"].astype(jnp.bfloat16)

    par = pltpu.CompilerParams(dimension_semantics=("parallel",))

    # ---- pass A: BN1 batch statistics of x
    xsum, xsq = pl.pallas_call(
        _x_stats_kernel,
        grid=(N,),
        in_specs=[pl.BlockSpec((H * W, Cin), lambda n: (n, 0))],
        out_specs=[pl.BlockSpec((1, 1, Cin), lambda n: (n, 0, 0)),
                   pl.BlockSpec((1, 1, Cin), lambda n: (n, 0, 0))],
        out_shape=[jax.ShapeDtypeStruct((N, 1, Cin), f32)] * 2,
        compiler_params=par,
        cost_estimate=pl.CostEstimate(flops=3 * N * H * W * Cin,
                                      transcendentals=0,
                                      bytes_accessed=4 * N * H * W * Cin),
    )(x2d)
    sc1, sh1 = _fold_bn(xsum.sum(0), xsq.sum(0), N * H * W, params["g1"], params["be1"])

    # ---- pass B: BN1+ReLU -> conv1(3x3, stride S); skip conv1x1(stride S); stats for BN2/BN_sk
    k1 = functools.partial(_stage1_kernel, H, W, Ho, Wo, S)
    small_in = pl.BlockSpec((1, Cin), lambda n: (0, 0))
    stat_out = pl.BlockSpec((1, 1, Cout), lambda n: (n, 0, 0))
    z1, sk, z1s, z1q, sks, skq = pl.pallas_call(
        k1,
        grid=(N,),
        in_specs=[pl.BlockSpec((None, H, W, Cin), lambda n: (n, 0, 0, 0)),  # batch dim squeezed
                  small_in, small_in,
                  pl.BlockSpec((9, Cin, Cout), lambda n: (0, 0, 0)),
                  pl.BlockSpec((Cin, Cout), lambda n: (0, 0))],
        out_specs=[pl.BlockSpec((HWo, Cout), lambda n: (n, 0)),
                   pl.BlockSpec((HWo, Cout), lambda n: (n, 0)),
                   stat_out, stat_out, stat_out, stat_out],
        out_shape=[jax.ShapeDtypeStruct((N * HWo, Cout), f32),
                   jax.ShapeDtypeStruct((N * HWo, Cout), f32),
                   jax.ShapeDtypeStruct((N, 1, Cout), f32),
                   jax.ShapeDtypeStruct((N, 1, Cout), f32),
                   jax.ShapeDtypeStruct((N, 1, Cout), f32),
                   jax.ShapeDtypeStruct((N, 1, Cout), f32)],
        scratch_shapes=[pltpu.VMEM((H + 2, W + 2, Cin), jnp.float32)],
        compiler_params=par,
        cost_estimate=pl.CostEstimate(
            flops=2 * N * HWo * Cout * (9 * Cin + Cin) + 4 * N * H * W * Cin,
            transcendentals=0,
            bytes_accessed=4 * N * (H * W * Cin + 2 * HWo * Cout)),
    )(x, sc1, sh1, w1_taps, wsk)

    sc2, sh2 = _fold_bn(z1s.sum(0), z1q.sum(0), N * HWo, params["g2"], params["be2"])
    sck, shk = _fold_bn(sks.sum(0), skq.sum(0), N * HWo, params["gsk"], params["besk"])

    # ---- pass C: BN2+ReLU -> conv2(3x3) + b2, skip BN, residual add
    k2 = functools.partial(_stage2_kernel, Ho, Wo)
    small_out = pl.BlockSpec((1, Cout), lambda n: (0, 0))
    out2d = pl.pallas_call(
        k2,
        grid=(N,),
        in_specs=[pl.BlockSpec((HWo, Cout), lambda n: (n, 0)),
                  pl.BlockSpec((HWo, Cout), lambda n: (n, 0)),
                  small_out, small_out,
                  pl.BlockSpec((9, Cout, Cout), lambda n: (0, 0, 0)),
                  small_out, small_out, small_out],
        out_specs=pl.BlockSpec((HWo, Cout), lambda n: (n, 0)),
        out_shape=jax.ShapeDtypeStruct((N * HWo, Cout), f32),
        scratch_shapes=[pltpu.VMEM((Ho + 2, Wo + 2, Cout), jnp.float32)],
        compiler_params=par,
        cost_estimate=pl.CostEstimate(flops=2 * N * HWo * Cout * 9 * Cout,
                                      transcendentals=0,
                                      bytes_accessed=4 * N * HWo * Cout * 3),
    )(z1, sk, sc2, sh2, w2_taps, params["b2"], sck, shk)

    out = out2d.reshape(N, Ho, Wo, Cout)
    return jnp.transpose(out, (0, 3, 1, 2))                        # -> NCHW (PyTorch layout)


# --------------------------------------------------------------------------- params / reference
def init_params(key, in_channel, out_channel):
    ks = jax.random.split(key, 12)
    nrm = lambda k, shape, s=0.1: s * jax.random.normal(k, shape, jnp.float32)
    p = {}
    p["g1"], p["be1"] = 1.0 + nrm(ks[0], (1, in_channel)), nrm(ks[1], (1, in_channel))
    p["w1"], p["b1"] = nrm(ks[2], (3, 3, in_channel, out_channel)), nrm(ks[3], (1, out_channel))
    p["g2"], p["be2"] = 1.0 + nrm(ks[4], (1, out_channel)), nrm(ks[5], (1, out_channel))
    p["w2"], p["b2"] = nrm(ks[6], (3, 3, out_channel, out_channel)), nrm(ks[7], (1, out_channel))
    p["wsk"], p["bsk"] = nrm(ks[8], (in_channel, out_channel)), nrm(ks[9], (1, out_channel))
    p["gsk"], p["besk"] = 1.0 + nrm(ks[10], (1, out_channel)), nrm(ks[11], (1, out_channel))
    return p


def reference_nhwc(x, p, stride):
    # pure-JAX, f32, faithful to the PyTorch forward (training-mode BN, all conv biases kept)
    def bn(z, g, b):
        m = jnp.mean(z, axis=(0, 1, 2), keepdims=True)
        v = jnp.mean((z - m) ** 2, axis=(0, 1, 2), keepdims=True)
        return (z - m) * jax.lax.rsqrt(v + EPS) * g + b
    y = jnp.maximum(bn(x, p["g1"], p["be1"]), 0.0)
    z = jax.lax.conv_general_dilated(y, p["w1"], (stride, stride), ((1, 1), (1, 1)),
                                     dimension_numbers=("NHWC", "HWIO", "NHWC")) + p["b1"]
    y = jnp.maximum(bn(z, p["g2"], p["be2"]), 0.0)
    net = jax.lax.conv_general_dilated(y, p["w2"], (1, 1), ((1, 1), (1, 1)),
                                       dimension_numbers=("NHWC", "HWIO", "NHWC")) + p["b2"]
    sk = jnp.einsum("nhwc,cd->nhwd", x[:, ::stride, ::stride, :], p["wsk"]) + p["bsk"]
    return net + bn(sk, p["gsk"], p["besk"])


if __name__ == "__main__":
    in_channel, out_channel = 16, 32
    stride = 1 if in_channel == out_channel else 2      # ResNetBlockBase logic
    assert stride == 2

    key = jax.random.PRNGKey(0)
    kx, kp = jax.random.split(key)
    x = jax.random.normal(kx, (2, in_channel, 16, 16), jnp.float32)   # NCHW, like PyTorch
    params = init_params(kp, in_channel, out_channel)

    out = resnet_preact_block_forward(x, params, stride)
    out = jax.block_until_ready(out)
    assert out.shape == (2, out_channel, 8, 8), out.shape

    ref = jnp.transpose(reference_nhwc(jnp.transpose(x, (0, 2, 3, 1)), params, stride),
                        (0, 3, 1, 2))
    err = float(jnp.max(jnp.abs(out - ref)))
    # bf16 matmul operands (f32 accumulation) vs. the f32 reference => a few-percent tolerance.
    if not jnp.allclose(out, ref, rtol=5e-2, atol=5e-2):
        raise AssertionError(f"mismatch vs reference, max abs err {err:e}")
    print("KERNEL_OK")
</pallas_src>

<mosaic_0001>
module attributes {stable_mosaic.version = 11 : i64} {
  func.func @_x_stats_kernel(%arg0: i32, %arg1: memref<256x16xf32, #tpu.memory_space<vmem>>, %arg2: memref<1x1x16xf32, #tpu.memory_space<vmem>>, %arg3: memref<1x1x16xf32, #tpu.memory_space<vmem>>) attributes {dimension_semantics = [#tpu.dimension_semantics<parallel>], iteration_bounds = array<i64: 2>, scalar_prefetch = 0 : i64, scratch_operands = 0 : i64, tpu.core_type = #tpu.core_type<tc>, window_params = [{transform_indices = @transform_0, window_bounds = array<i64: 256, 16>}, {transform_indices = @transform_1, window_bounds = array<i64: 1, 1, 16>}, {transform_indices = @transform_2, window_bounds = array<i64: 1, 1, 16>}]} {
    %c0 = arith.constant 0 : index
    %c0_0 = arith.constant 0 : index
    %0 = vector.load %arg1[%c0, %c0_0] : memref<256x16xf32, #tpu.memory_space<vmem>>, vector<256x16xf32>
    %cst = arith.constant dense<0.000000e+00> : vector<16xf32>
    %1 = vector.multi_reduction <add>, %0, %cst [0] : vector<256x16xf32> to vector<16xf32>
    %2 = vector.shape_cast %1 : vector<16xf32> to vector<1x1x16xf32>
    %c0_1 = arith.constant 0 : index
    %c0_2 = arith.constant 0 : index
    %c0_3 = arith.constant 0 : index
    %3 = vector.load %arg2[%c0_1, %c0_2, %c0_3] : memref<1x1x16xf32, #tpu.memory_space<vmem>>, vector<1x1x16xf32>
    tpu.vector_store %arg2[%c0_1, %c0_2, %c0_3], %2 {strides = array<i32>} : memref<1x1x16xf32, #tpu.memory_space<vmem>>, vector<1x1x16xf32>,
    %4 = arith.mulf %0, %0 : vector<256x16xf32>
    %cst_4 = arith.constant dense<0.000000e+00> : vector<16xf32>
    %5 = vector.multi_reduction <add>, %4, %cst_4 [0] : vector<256x16xf32> to vector<16xf32>
    %6 = vector.shape_cast %5 : vector<16xf32> to vector<1x1x16xf32>
    %c0_5 = arith.constant 0 : index
    %c0_6 = arith.constant 0 : index
    %c0_7 = arith.constant 0 : index
    %7 = vector.load %arg3[%c0_5, %c0_6, %c0_7] : memref<1x1x16xf32, #tpu.memory_space<vmem>>, vector<1x1x16xf32>
    tpu.vector_store %arg3[%c0_5, %c0_6, %c0_7], %6 {strides = array<i32>} : memref<1x1x16xf32, #tpu.memory_space<vmem>>, vector<1x1x16xf32>,
    return
  }
  func.func @transform_0(%arg0: i32) -> (i32, i32) {
    %c0_i32 = arith.constant 0 : i32
    %c0_i32_0 = arith.constant 0 : i32
    return %arg0, %c0_i32 : i32, i32
  }
  func.func @transform_1(%arg0: i32) -> (i32, i32, i32) {
    %c0_i32 = arith.constant 0 : i32
    %c0_i32_0 = arith.constant 0 : i32
    %c0_i32_1 = arith.constant 0 : i32
    return %arg0, %c0_i32, %c0_i32_0 : i32, i32, i32
  }
  func.func @transform_2(%arg0: i32) -> (i32, i32, i32) {
    %c0_i32 = arith.constant 0 : i32
    %c0_i32_0 = arith.constant 0 : i32
    %c0_i32_1 = arith.constant 0 : i32
    return %arg0, %c0_i32, %c0_i32_0 : i32, i32, i32
  }
}

</mosaic_0001>

<bundles_post_ra>
// kernel: tpu_custom_call.1
= control target key start
LH: loop header
LB: loop body
LE: loop exit
PB: predicated region body
PF: predicated region fallthrough
CT: control target
= control target key end

     0   :  { %8 = vsyncpa [#allocation3], 0  ;;  %s864_s0 = inlined_call_operand.vmem [shape: f32[512,16], index: 0, kind: input, shape index: {}]   ;;  %s865_s1 = inlined_call_operand.hbm [shape: f32[2,1,16], index: 1, kind: output, shape index: {0}]   ;;  %s866_s2 = inlined_call_operand.hbm [shape: f32[2,1,16], index: 2, kind: output, shape index: {1}]  }
   0x1   :  { %10 = vsyncpa [#allocation3 + $0x1], 0 }
   0x2   :  { %11 = vsyncpa [#allocation5], 0 }
   0x3   :  { %13 = vsyncpa [#allocation5 + $0x1], 0  ;;  %s635_s9 = smov 0   ;;  %s637_s10 = smov 0  }
   0x4   :  { %s639_s11 = smov 0   ;;  %s641_s12 = smov 0  }
   0x5 LB: > { %s656_s13 = sadd.s32 4294967295, %s616_s12   ;;  %s472_s14 = sadd.s32 4294967294, %s616_s12   ;;  %s616_s12 = sphi %s641_s12, %s872_s12   ;;  %s612_s11 = sphi %s639_s11, %s871_s11   ;;  %s608_s10 = sphi %s637_s10, %s870_s10   ;;  %s604_s9 = sphi %s635_s9, %s869_s9  }
   0x6   : > { %s660_s15 = sadd.s32 1, %s616_s12   ;;  %s52_s16 = sadd.s32 1, %s612_s11 }
   0x7   : > { %s49_s17 = ssub.s32 %s616_s12, %s660_s15  ;;  %p62_p0 = scmp.ne.s32.totalorder %s612_s11, %s608_s10 }
   0x8   : > { %p50_p1 = scmp.eq.s32.totalorder %s49_s17, 0  ;;  %p63_p2 = scmp.eq.s32.totalorder %s656_s13, 1 }
   0x9   : > { %p68_p3 = scmp.ne.s32.totalorder %s608_s10, %s604_s9  ;;  %p69_p4 = scmp.eq.s32.totalorder %s472_s14, 1 }
   0xa   : > { %s671_s18 = scalar_select %p50_p1, %s612_s11, %s52_s16  }
   0xb   : > { %p673_p5 = por %p63_p2, %p62_p0  ;;  %p677_p6 = por %p69_p4, %p68_p3 }
   0xc   : > { %p475_p7 = scmp.ge.s32.totalorder %s616_s12, 1  ;;  %p122_p8 = scmp.lt.s32.totalorder %s616_s12, 3 }
   0xe   : > { %p123_p9 = pnand %p475_p7, %p122_p8 }
   0xf   : > { %s476_s21 = sshll.u32 (!%p123_p9), %s656_s13, 5  ;;  %s779_s26 = sand.u32 (!%p123_p9), 1, %s608_s10  }
  0x10   : > { %126 = sbr.rel (%p123_p9) target bundleno = 141 (0x8d), region = 24  ;;  %p148_p10 = scmp.lt.s32.totalorder (!%p123_p9), %s476_s21, 63 }
  0x11   : > { %s140_s27 = scalar_lea.vmem (!%p123_p9), [#allocation2], %s779_s26  ;;  %s478_s29 = sshll.u32 (!%p123_p9), %s656_s13, 4 }
  0x12   : > { %s376_s28 = sshll.u32 (!%p123_p9), %s140_s27, 4  ;;  %s795_s4 = scalar_lea.hbm (!%p123_p9), %s865_s1, %s478_s29  ;;  %s787_s28 = int_to_ptr.vmem [resolvable:$true] %s376_s28 }
  0x13   : > { %s360_s5 = scalar_lea.sflag (!%p123_p9), [#allocation3], %s779_s26  ;;  %s526_s6 = scalar_lea.vmem (!%p123_p9), %s787_s28, 16 }
  0x14   : > { %p527_p11 = scmp.ne.s32.totalorder (!%p123_p9), %s787_s28, %s526_s6  ;;  %s618_s7 = smov (!%p123_p9), [#allocation2]  }
  0x15   : > { %s874_s21 = smov (!%p148_p10, %s476_s21), 63  ;;  %vm185_vm0 = vcmask 130048   ;;  %vm255_vm1 = vcmask 122880   ;;  %s530_s8 = sshll.u32 %s618_s7, 4  ;;  %s531_s8 = int_to_ptr.vmem [resolvable:$false] %s530_s8 }
  0x16   : > { %s477_s22 = sshll.u32 %s874_s21, 3  ;;  %p528_p12 = pnand %p527_p11, %p673_p5 }
  0x17   : > { %s687_s25 = scalar_lea.vmem %s864_s0, %s477_s22  ;;  %s532_s14 = scalar_lea.vmem %s531_s8, 32 }
  0x18   : > { %v153_v0 = vld [vmem:[%s687_s25] sm:$0xff]  ;;  %v154_v1 = vld [vmem:[%s687_s25 + $0x8] sm:$0xff]  ;;  %v155_v2 = vld [vmem:[%s687_s25 + $0x10] sm:$0xff]  ;;  %p529_p13 = pneg %p528_p12  ;;  %p533_p0 = scmp.lt.s32.totalorder %s787_s28, %s531_s8 }
  0x19   : > { %v186_v3 = vsel %vm185_vm0, %v153_v0, 0.0  ;;  %v187_v4 = vsel %vm185_vm0, %v154_v1, 0.0  ;;  %v189_v5 = vsel %vm185_vm0, %v155_v2, 0.0  ;;  %v156_v6 = vld [vmem:[%s687_s25 + $0x18] sm:$0xff]  ;;  %v157_v9 = vld [vmem:[%s687_s25 + $0x20] sm:$0xff]  ;;  %v158_v12 = vld [vmem:[%s687_s25 + $0x28] sm:$0xff]  ;;  %v257_v27 = vmul.f32 %v153_v0, %v153_v0  ;;  %p534_p1 = scmp.lt.s32.totalorder %s532_s14, %s526_s6 }
  0x1a   : > { %v188_v7 = vadd.f32 %v187_v4, %v186_v3  ;;  %v191_v8 = vsel %vm185_vm0, %v156_v6, 0.0  ;;  %v193_v11 = vsel %vm185_vm0, %v157_v9, 0.0  ;;  %v195_v14 = vsel %vm185_vm0, %v158_v12, 0.0  ;;  %v159_v15 = vld [vmem:[%s687_s25 + $0x30] sm:$0xff]  ;;  %v160_v18 = vld [vmem:[%s687_s25 + $0x38] sm:$0xff]  ;;  %v161_v21 = vld [vmem:[%s687_s25 + $0x40] sm:$0xff] }
  0x1b   : > { %v197_v17 = vsel %vm185_vm0, %v159_v15, 0.0  ;;  %v199_v20 = vsel %vm185_vm0, %v160_v18, 0.0  ;;  %v201_v23 = vsel %vm185_vm0, %v161_v21, 0.0  ;;  %v162_v24 = vld [vmem:[%s687_s25 + $0x48] sm:$0xff]  ;;  %v258_v28 = vmul.f32 %v154_v1, %v154_v1  ;;  %v163_v30 = vld [vmem:[%s687_s25 + $0x50] sm:$0xff]  ;;  %v164_v32 = vld [vmem:[%s687_s25 + $0x58] sm:$0xff]  ;;  %p535_p2 = por %p534_p1, %p533_p0 }
  0x1c   : > { %v190_v10 = vadd.f32 %v189_v5, %v188_v7  ;;  %v203_v26 = vsel %vm185_vm0, %v162_v24, 0.0  ;;  %v259_v29 = vmul.f32 %v155_v2, %v155_v2  ;;  %v205_v33 = vsel %vm185_vm0, %v163_v30, 0.0  ;;  %v165_v41 = vld [vmem:[%s687_s25 + $0x60] sm:$0xff]  ;;  %v166_v47 = vld [vmem:[%s687_s25 + $0x68] sm:$0xff]  ;;  %v167_v53 = vld [vmem:[%s687_s25 + $0x70] sm:$0xff] }
  0x1d   : > { %v260_v34 = vmul.f32 %v156_v6, %v156_v6  ;;  %v207_v36 = vsel %vm185_vm0, %v164_v32, 0.0  ;;  %v261_v37 = vmul.f32 %v157_v9, %v157_v9  ;;  %v289_v38 = vsel %vm185_vm0, %v257_v27, 0.0  ;;  %v168_v59 = vld [vmem:[%s687_s25 + $0x78] sm:$0xff]  ;;  %v169_v1 = vld [vmem:[%s687_s25 + $0x80] sm:$0xff]  ;;  %v170_v7 = vld [vmem:[%s687_s25 + $0x88] sm:$0xff]  ;;  %p536_p3 = pnand %p535_p2, %p529_p13 }
  0x1e   : > { %v192_v13 = vadd.f32 %v191_v8, %v190_v10  ;;  %v290_v39 = vsel %vm185_vm0, %v258_v28, 0.0  ;;  %v292_v40 = vsel %vm185_vm0, %v259_v29, 0.0  ;;  %v209_v44 = vsel %vm185_vm0, %v165_v41, 0.0 }
  0x1f   : > { %v291_v43 = vadd.f32 %v290_v39, %v289_v38  ;;  %v262_v45 = vmul.f32 %v158_v12, %v158_v12  ;;  %v294_v46 = vsel %vm185_vm0, %v260_v34, 0.0  ;;  %v211_v50 = vsel %vm185_vm0, %v166_v47, 0.0 }
  0x20   : > { %v194_v16 = vadd.f32 %v193_v11, %v192_v13  ;;  %v263_v51 = vmul.f32 %v159_v15, %v159_v15  ;;  %v296_v52 = vsel %vm185_vm0, %v261_v37, 0.0  ;;  %v213_v56 = vsel %vm185_vm0, %v167_v53, 0.0  ;;  %v171_v13 = vld [vmem:[%s687_s25 + $0x90] sm:$0xff] }
  0x21   : > { %v293_v49 = vadd.f32 %v292_v40, %v291_v43  ;;  %v264_v57 = vmul.f32 %v160_v18, %v160_v18  ;;  %v298_v58 = vsel %vm185_vm0, %v262_v45, 0.0  ;;  %v215_v62 = vsel %vm185_vm0, %v168_v59, 0.0  ;;  %v175_v37 = vld [vmem:[%s687_s25 + $0xb0] sm:$0xff]  ;;  %v176_v43 = vld [vmem:[%s687_s25 + $0xb8] sm:$0xff] }
  0x22   : > { %v196_v19 = vadd.f32 %v195_v14, %v194_v16  ;;  %v265_v63 = vmul.f32 %v161_v21, %v161_v21  ;;  %v300_v0 = vsel %vm185_vm0, %v263_v51, 0.0  ;;  %v217_v4 = vsel %vm185_vm0, %v169_v1, 0.0 }
  0x23   : > { %v295_v55 = vadd.f32 %v294_v46, %v293_v49  ;;  %v266_v5 = vmul.f32 %v162_v24, %v162_v24  ;;  %v302_v6 = vsel %vm185_vm0, %v264_v57, 0.0  ;;  %v219_v10 = vsel %vm185_vm0, %v170_v7, 0.0  ;;  %v177_v49 = vld [vmem:[%s687_s25 + $0xc0] sm:$0xff] }
  0x24   : > { %v198_v22 = vadd.f32 %v197_v17, %v196_v19  ;;  %v267_v11 = vmul.f32 %v163_v30, %v163_v30  ;;  %v304_v12 = vsel %vm185_vm0, %v265_v63, 0.0  ;;  %v221_v16 = vsel %vm185_vm0, %v171_v13, 0.0  ;;  %v172_v19 = vld [vmem:[%s687_s25 + $0x98] sm:$0xff] }
  0x25   : > { %v297_v61 = vadd.f32 %v296_v52, %v295_v55  ;;  %v268_v17 = vmul.f32 %v164_v32, %v164_v32  ;;  %v306_v18 = vsel %vm185_vm0, %v266_v5, 0.0  ;;  %v270_v29 = vmul.f32 %v166_v47, %v166_v47  ;;  %v178_v55 = vld [vmem:[%s687_s25 + $0xc8] sm:$0xff] }
  0x26   : > { %v200_v25 = vadd.f32 %v199_v20, %v198_v22  ;;  %v223_v22 = vsel %vm185_vm0, %v172_v19, 0.0  ;;  %v308_v24 = vsel %vm185_vm0, %v267_v11, 0.0  ;;  %v229_v40 = vsel %vm185_vm0, %v175_v37, 0.0 }
  0x27   : > { %v299_v3 = vadd.f32 %v298_v58, %v297_v61  ;;  %v310_v30 = vsel %vm185_vm0, %v268_v17, 0.0  ;;  %v231_v46 = vsel %vm185_vm0, %v176_v43, 0.0  ;;  %v273_v47 = vmul.f32 %v169_v1, %v169_v1  ;;  %v179_v61 = vld [vmem:[%s687_s25 + $0xd0] sm:$0xff] }
  0x28   : > { %v202_v31 = vadd.f32 %v201_v23, %v200_v25  ;;  %v269_v23 = vmul.f32 %v165_v41, %v165_v41  ;;  %v173_v25 = vld [vmem:[%s687_s25 + $0xa0] sm:$0xff]  ;;  %v272_v41 = vmul.f32 %v168_v59, %v168_v59  ;;  %v233_v52 = vsel %vm185_vm0, %v177_v49, 0.0 }
  0x29   : > { %v301_v9 = vadd.f32 %v300_v0, %v299_v3  ;;  %v225_v28 = vsel %vm185_vm0, %v173_v25, 0.0  ;;  %v235_v58 = vsel %vm185_vm0, %v178_v55, 0.0  ;;  %v275_v59 = vmul.f32 %v171_v13, %v171_v13  ;;  %v180_v3 = vld [vmem:[%s687_s25 + $0xd8] sm:$0xff] }
  0x2a   : > { %v204_v35 = vadd.f32 %v203_v26, %v202_v31  ;;  %v174_v31 = vld [vmem:[%s687_s25 + $0xa8] sm:$0xff]  ;;  %v237_v0 = vsel %vm185_vm0, %v179_v61, 0.0  ;;  %v276_v1 = vmul.f32 %v172_v19, %v172_v19  ;;  %v279_v19 = vmul.f32 %v175_v37, %v175_v37 }
  0x2b   : > { %v303_v15 = vadd.f32 %v302_v6, %v301_v9  ;;  %v227_v34 = vsel %vm185_vm0, %v174_v31, 0.0  ;;  %v239_v6 = vsel %vm185_vm0, %v180_v3, 0.0  ;;  %v181_v9 = vld [vmem:[%s687_s25 + $0xe0] sm:$0xff]  ;;  %v278_v13 = vmul.f32 %v174_v31, %v174_v31 }
  0x2c   : > { %v206_v42 = vadd.f32 %v205_v33, %v204_v35  ;;  %v271_v35 = vmul.f32 %v167_v53, %v167_v53  ;;  %v274_v53 = vmul.f32 %v170_v7, %v170_v7  ;;  %v277_v7 = vmul.f32 %v173_v25, %v173_v25 }
  0x2d   : > { %v305_v21 = vadd.f32 %v304_v12, %v303_v15  ;;  %v241_v12 = vsel %vm185_vm0, %v181_v9, 0.0  ;;  %v182_v15 = vld [vmem:[%s687_s25 + $0xe8] sm:$0xff]  ;;  %v280_v25 = vmul.f32 %v176_v43, %v176_v43  ;;  %v281_v31 = vmul.f32 %v177_v49, %v177_v49 }
  0x2e   : > { %v208_v48 = vadd.f32 %v207_v36, %v206_v42  ;;  %v312_v36 = vsel %vm185_vm0, %v269_v23, 0.0  ;;  %v314_v42 = vsel %vm185_vm0, %v270_v29, 0.0  ;;  %v284_v43 = vmul.f32 %v180_v3, %v180_v3 }
  0x2f   : > { %v307_v27 = vadd.f32 %v306_v18, %v305_v21  ;;  %v243_v18 = vsel %vm185_vm0, %v182_v15, 0.0  ;;  %v183_v21 = vld [vmem:[%s687_s25 + $0xf0] sm:$0xff] }
  0x30   : > { %v210_v54 = vadd.f32 %v209_v44, %v208_v48  ;;  %v316_v48 = vsel %vm185_vm0, %v271_v35, 0.0  ;;  %v282_v35 = vmul.f32 %v178_v55, %v178_v55  ;;  %v287_v55 = vmul.f32 %v183_v21, %v183_v21 }
  0x31   : > { %v309_v33 = vadd.f32 %v308_v24, %v307_v27  ;;  %v245_v24 = vsel %vm185_vm0, %v183_v21, 0.0  ;;  %v184_v27 = vld [vmem:[%s687_s25 + $0xf8] sm:$0xff] }
  0x32   : > { %v212_v60 = vadd.f32 %v211_v50, %v210_v54  ;;  %v318_v54 = vsel %vm185_vm0, %v272_v41, 0.0 }
  0x33   : > { %v311_v39 = vadd.f32 %v310_v30, %v309_v33  ;;  %v247_v30 = vsel %vm185_vm0, %v184_v27, 0.0 }
  0x34   : > { %v214_v2 = vadd.f32 %v213_v56, %v212_v60  ;;  %v320_v60 = vsel %vm185_vm0, %v273_v47, 0.0  ;;  %v285_v47 = vmul.f32 %v181_v9, %v181_v9 }
  0x35   : > { %v313_v45 = vadd.f32 %v312_v36, %v311_v39  ;;  %v334_v36 = vsel %vm185_vm0, %v280_v25, 0.0  ;;  %v283_v39 = vmul.f32 %v179_v61, %v179_v61 }
  0x36   : > { %v216_v8 = vadd.f32 %v215_v62, %v214_v2  ;;  %v322_v2 = vsel %vm185_vm0, %v274_v53, 0.0 }
  0x37   : > { %v315_v51 = vadd.f32 %v314_v42, %v313_v45 }
  0x38   : > { %v218_v14 = vadd.f32 %v217_v4, %v216_v8  ;;  %v324_v8 = vsel %vm185_vm0, %v275_v59, 0.0  ;;  %v288_v59 = vmul.f32 %v184_v27, %v184_v27 }
  0x39   : > { %v317_v57 = vadd.f32 %v316_v48, %v315_v51  ;;  %v340_v48 = vsel %vm185_vm0, %v283_v39, 0.0  ;;  %v286_v51 = vmul.f32 %v182_v15, %v182_v15 }
  0x3a   : > { %v220_v20 = vadd.f32 %v219_v10, %v218_v14  ;;  %v326_v14 = vsel %vm185_vm0, %v276_v1, 0.0  ;;  %v350_v1 = vsel %vm185_vm0, %v288_v59, 0.0 }
  0x3b   : > { %v319_v63 = vadd.f32 %v318_v54, %v317_v57 }
  0x3c   : > { %v222_v26 = vadd.f32 %v221_v16, %v220_v20  ;;  %v328_v20 = vsel %vm185_vm0, %v277_v7, 0.0 }
  0x3d   : > { %v321_v5 = vadd.f32 %v320_v60, %v319_v63  ;;  %v346_v60 = vsel %vm185_vm0, %v286_v51, 0.0  ;;  %v348_v63 = vsel %vm185_vm0, %v287_v55, 0.0 }
  0x3e   : > { %v224_v32 = vadd.f32 %v223_v22, %v222_v26  ;;  %v330_v26 = vsel %vm185_vm0, %v278_v13, 0.0 }
  0x3f   : > { %v323_v11 = vadd.f32 %v322_v2, %v321_v5 }
  0x40   : > { %v226_v38 = vadd.f32 %v225_v28, %v224_v32  ;;  %v332_v32 = vsel %vm185_vm0, %v279_v19, 0.0 }
  0x41   : > { %v325_v17 = vadd.f32 %v324_v8, %v323_v11 }
  0x42   : > { %v228_v44 = vadd.f32 %v227_v34, %v226_v38 }
  0x43   : > { %v327_v23 = vadd.f32 %v326_v14, %v325_v17 }
  0x44   : > { %v230_v50 = vadd.f32 %v229_v40, %v228_v44  ;;  %v336_v40 = vsel %vm185_vm0, %v281_v31, 0.0  ;;  %v338_v44 = vsel %vm185_vm0, %v282_v35, 0.0 }
  0x45   : > { %v329_v29 = vadd.f32 %v328_v20, %v327_v23 }
  0x46   : > { %v232_v56 = vadd.f32 %v231_v46, %v230_v50 }
  0x47   : > { %v331_v34 = vadd.f32 %v330_v26, %v329_v29 }
  0x48   : > { %v234_v62 = vadd.f32 %v233_v52, %v232_v56  ;;  %v342_v52 = vsel %vm185_vm0, %v284_v43, 0.0  ;;  %v344_v56 = vsel %vm185_vm0, %v285_v47, 0.0 }
  0x49   : > { %v333_v38 = vadd.f32 %v332_v32, %v331_v34 }
  0x4a   : > { %v236_v4 = vadd.f32 %v235_v58, %v234_v62 }
  0x4b   : > { %v335_v42 = vadd.f32 %v334_v36, %v333_v38 }
  0x4c   : > { %v238_v10 = vadd.f32 %v237_v0, %v236_v4 }
  0x4d   : > { %v337_v46 = vadd.f32 %v336_v40, %v335_v42 }
  0x4e   : > { %v240_v16 = vadd.f32 %v239_v6, %v238_v10 }
  0x4f   : > { %v339_v50 = vadd.f32 %v338_v44, %v337_v46 }
  0x50   : > { %v242_v22 = vadd.f32 %v241_v12, %v240_v16 }
  0x51   : > { %v341_v54 = vadd.f32 %v340_v48, %v339_v50 }
  0x52   : > { %v244_v28 = vadd.f32 %v243_v18, %v242_v22 }
  0x53   : > { %v343_v58 = vadd.f32 %v342_v52, %v341_v54 }
  0x54   : > { %v246_v33 = vadd.f32 %v245_v24, %v244_v28 }
  0x55   : > { %v345_v62 = vadd.f32 %v344_v56, %v343_v58 }
  0x56   : > { %v248_v37 = vadd.f32 %v247_v30, %v246_v33 }
  0x57   : > { %v347_v0 = vadd.f32 %v346_v60, %v345_v62 }
  0x58   : > { %v249_v41 = vrot.slane %v248_v37, 4 }
  0x5a   : > { %v250_v45 = vadd.f32 %v249_v41, %v248_v37 }
  0x5c   : > { %v251_v49 = vrot.slane %v250_v45, 2 }
  0x5e   : > { %v252_v53 = vadd.f32 %v251_v49, %v250_v45 }
  0x60   : > { %v253_v57 = vrot.slane %v252_v53, 1 }
  0x62   : > { %v254_v61 = vadd.f32 %v253_v57, %v252_v53 }
  0x64   : > { %256 = vst.msk [vmem:[%s140_s27] sm:$0x1] %vm255_vm1, %v254_v61 }
  0x65   : > { %539 = shalt.err (!%p536_p3)
}
  0x66   : > { %s540_s16 = scalar_lea.hbm %s795_s4, 16  ;;  %s544_s22 = scalar_lea.hbm %s865_s1, 32 }
  0x67   : > { %p541_p4 = scmp.ne.s32.totalorder %s795_s4, %s540_s16  ;;  %p545_p9 = scmp.lt.s32.totalorder %s795_s4, %s865_s1 }
  0x68   : > { %p546_p10 = scmp.lt.s32.totalorder %s544_s22, %s540_s16 }
  0x69   : > { %p542_p7 = pnand %p541_p4, %p673_p5 }
  0x6a   : > { %p547_p11 = por %p546_p10, %p545_p9 }
  0x6b   : > { %p543_p8 = pneg %p542_p7 }
  0x6d   : > { %p548_p12 = pnand %p547_p11, %p543_p8 }
  0x6f   : > { %551 = shalt.err (!%p548_p12)
}
  0x70   : > { %482 = dma.vmem_to_hbm [thread:$0]  (%p673_p5), %s787_s28, 16, %s795_s4, %s360_s5   ;;  %v349_v2 = vadd.f32 %v348_v63, %v347_v0 }
  0x71   : > { %s146_s25 = scalar_lea.vmem [#allocation4], %s779_s26  ;;  %s387_s28 = scalar_lea.hbm %s866_s2, %s478_s29 }
  0x72   : > { %v351_v3 = vadd.f32 %v350_v1, %v349_v2  ;;  %s389_s27 = sshll.u32 %s146_s25, 4  ;;  %s364_s4 = scalar_lea.sflag [#allocation5], %s779_s26  ;;  %s822_s27 = int_to_ptr.vmem [resolvable:$true] %s389_s27 }
  0x73   : > { %s552_s5 = scalar_lea.vmem %s822_s27, 16  ;;  %s619_s6 = smov [#allocation4]  }
  0x74   : > { %v352_v4 = vrot.slane %v351_v3, 4  ;;  %p553_p13 = scmp.ne.s32.totalorder %s822_s27, %s552_s5  ;;  %s556_s7 = sshll.u32 %s619_s6, 4  ;;  %s557_s7 = int_to_ptr.vmem [resolvable:$false] %s556_s7 }
  0x75   : > { %s558_s8 = scalar_lea.vmem %s557_s7, 32  ;;  %p559_p2 = scmp.lt.s32.totalorder %s822_s27, %s557_s7 }
  0x76   : > { %v353_v5 = vadd.f32 %v352_v4, %v351_v3  ;;  %p554_p0 = pnand %p553_p13, %p673_p5  ;;  %p560_p3 = scmp.lt.s32.totalorder %s558_s8, %s552_s5 }
  0x78   : > { %v354_v6 = vrot.slane %v353_v5, 2  ;;  %p555_p1 = pneg %p554_p0  ;;  %p561_p4 = por %p560_p3, %p559_p2 }
  0x7a   : > { %v355_v7 = vadd.f32 %v354_v6, %v353_v5  ;;  %p562_p7 = pnand %p561_p4, %p555_p1 }
  0x7c   : > { %v356_v8 = vrot.slane %v355_v7, 1 }
  0x7e   : > { %v357_v9 = vadd.f32 %v356_v8, %v355_v7 }
  0x80   : > { %358 = vst.msk [vmem:[%s146_s25] sm:$0x1] %vm255_vm1, %v357_v9 }
  0x81   : > { %565 = shalt.err (!%p562_p7)
}
  0x82   : > { %s566_s13 = scalar_lea.hbm %s387_s28, 16  ;;  %s570_s14 = scalar_lea.hbm %s866_s2, 32 }
  0x83   : > { %p567_p8 = scmp.ne.s32.totalorder %s387_s28, %s566_s13  ;;  %p571_p11 = scmp.lt.s32.totalorder %s387_s28, %s866_s2 }
  0x84   : > { %p572_p12 = scmp.lt.s32.totalorder %s570_s14, %s566_s13 }
  0x85   : > { %p568_p9 = pnand %p567_p8, %p673_p5 }
  0x86   : > { %p573_p13 = por %p572_p12, %p571_p11 }
  0x87   : > { %p569_p10 = pneg %p568_p9 }
  0x89   : > { %p574_p0 = pnand %p573_p13, %p569_p10 }
  0x8b   : > { %577 = shalt.err (!%p574_p0)
}
  0x8c   : > { %483 = dma.vmem_to_hbm [thread:$0]  (%p673_p5), %s822_s27, 16, %s387_s28, %s364_s4  }
  0x8d PF: > { %p493_p1 = scmp.ge.s32.totalorder %s616_s12, 2  ;;  %s401_s21 = sand.u32 1, %s604_s9  }
  0x8e   : > { %s402_s22 = scalar_lea.sflag [#allocation3], %s401_s21 }
  0x8f   : > { %p487_p2 = pnand %p493_p1, %p677_p6 }
  0x91   : > { %p488_p3 = pneg %p487_p2 }
  0x93   : > { %595 = dma.done.wait (%p488_p3), %s402_s22, 16  }
  0x94   : > { %597 = vsyncadd (%p488_p3), %s402_s22, 4294967280  ;;  %s410_s23 = scalar_lea.sflag [#allocation5], %s401_s21 }
  0x95   : > { %599 = dma.done.wait (%p488_p3), %s410_s23, 16  }
  0x96   : > { %601 = vsyncadd (%p488_p3), %s410_s23, 4294967280  ;;  %p16_p5 = scmp.ge.s32.totalorder %s660_s15, 4   ;;  %s869_s9 = smov %s608_s10 }
  0x97   : > { %s870_s10 = smov %s612_s11  ;;  %s871_s11 = smov %s671_s18 }
  0x98   : > { %s872_s12 = smov %s660_s15  ;;  %18 = sbr.rel (!%p16_p5) target bundleno = 5 (0x5), region = 76 }
  0x9d   :  { %414 = vsyncpa [#allocation3], 1 }
  0x9e   :  { %416 = vsyncpa [#allocation3 + $0x1], 1 }
  0x9f   :  { %417 = vsyncpa [#allocation5], 1 }
  0xa0   :  { %419 = vsyncpa [#allocation5 + $0x1], 1 }

</bundles_post_ra>
